<compile_context>
chip_gen: v5e
topology: v5e:2x2
jax: 0.10.0
libtpu: 0.0.40
codegen_flags: <defaults>
</compile_context>

<pallas_src>
import functools

import jax
import jax.numpy as jnp
from jax import lax
from jax.experimental import pallas as pl
from jax.experimental.pallas import tpu as pltpu


def _round_up(x, m):
    return ((x + m - 1) // m) * m


def _choose_slab(rows, freq_bins):
    """Pick a lane-dense 2-D view (R, W) of the (rows, freq_bins) data."""
    if freq_bins % 128 == 0:
        return rows, freq_bins
    total = rows * freq_bins
    for w in (512, 256, 128):
        if total % w == 0:               # pure metadata reshape, no HBM copy
            return total // w, w
    # Fallback: keep (rows, freq_bins); vregs are lane-padded (HBM traffic
    # unchanged, some VPU/EUP waste on the padded lanes).
    return rows, freq_bins


def _sc_partials_kernel(x_ref, y_ref, num_ref, den_ref, *, rows, tile_rows, ragged):
    """Per-block partial L1 sums: num = |sqrt(y)-sqrt(x)|, den = sqrt(y)."""
    i = pl.program_id(0)
    w = x_ref.shape[-1]

    def emit(masked):
        x = x_ref[...].astype(jnp.float32)
        y = y_ref[...].astype(jnp.float32)
        if masked:
            # Zero rows past the true row count (OOB tail of the last block).
            # Masking the raw inputs keeps sqrt() on clean data (no NaNs).
            row = lax.broadcasted_iota(jnp.int32, x.shape, 0)
            valid = (i * tile_rows + row) < rows
            x = jnp.where(valid, x, 0.0)
            y = jnp.where(valid, y, 0.0)
        xs = jnp.sqrt(x)
        ys = jnp.sqrt(y)
        num = jnp.abs(ys - xs)
        den = ys  # sqrt output is nonnegative -> |ys| == ys
        # Fold (tile_rows, W) onto (8, W): sum over the vreg-stacking axis only
        # (pure VPU); no cross-lane (XLU) reduction happens in the kernel.
        num_ref[0] = num.reshape(tile_rows // 8, 8, w).sum(axis=0)
        den_ref[0] = den.reshape(tile_rows // 8, 8, w).sum(axis=0)

    if ragged:
        last = pl.num_programs(0) - 1

        @pl.when(i < last)
        def _():
            emit(False)          # full tiles: no mask, no iota

        @pl.when(i == last)
        def _():
            emit(True)           # only the last (partial) tile pays the mask
    else:
        emit(False)


def spectral_convergence_loss(x_mag, y_mag, *, block_rows=None,
                              target_block_bytes=2 << 20,
                              vmem_budget_bytes=24 << 20):
    """x_mag, y_mag: (B, #frames, #freq_bins) nonnegative magnitude spectrograms."""
    assert x_mag.shape == y_mag.shape
    B, T, F = x_mag.shape
    n_elems = B * T * F
    itemsize = jnp.dtype(x_mag.dtype).itemsize

    # Lane-dense slab (metadata-only reshape).
    R, W = _choose_slab(B * T, F)
    x2 = x_mag.reshape(R, W)
    y2 = y_mag.reshape(R, W)

    # Sublane alignment from dtype packing (8 for f32, 16 for bf16).
    align = max(8, 32 // itemsize)

    # Byte-targeted tile: ~target_block_bytes per input block, clamped so that
    # double-buffered inputs + in-kernel f32 temporaries fit the VMEM budget.
    bytes_per_row = 2 * 2 * W * itemsize + 4 * W * 4   # 2 ins x 2 bufs + xs/ys/num/den
    max_rows_budget = max(align, (vmem_budget_bytes // bytes_per_row) // align * align)
    target_rows = max(align, (target_block_bytes // (W * itemsize)) // align * align)
    tile_rows = min(target_rows, max_rows_budget, _round_up(R, align))
    if block_rows is not None:  # test / tuning override
        tile_rows = min(_round_up(block_rows, align), _round_up(R, align))
    tile_rows = max(tile_rows, align)

    n_blocks = pl.cdiv(R, tile_rows)
    ragged = (R % tile_rows) != 0

    kernel = functools.partial(_sc_partials_kernel, rows=R,
                               tile_rows=tile_rows, ragged=ragged)

    # Right-sized scoped VMEM: dbl-buffered inputs + f32 temporaries + outputs
    # + ~4 MiB headroom, capped well below v7x's 64 MiB physical VMEM.
    need = (2 * 2 * tile_rows * W * itemsize      # 2 inputs x 2 buffers
            + 4 * tile_rows * W * 4               # xs/ys/num/den f32 temporaries
            + 2 * 2 * 8 * W * 4)                  # 2 outputs x 2 buffers (tiny)
    vmem_limit = int(min(max(need + (4 << 20), 8 << 20), 48 << 20))

    cost = pl.CostEstimate(
        flops=4 * n_elems,
        transcendentals=2 * n_elems,
        bytes_accessed=2 * n_elems * itemsize + 2 * n_blocks * 8 * W * 4,
    )

    num_parts, den_parts = pl.pallas_call(
        kernel,
        out_shape=(jax.ShapeDtypeStruct((n_blocks, 8, W), jnp.float32),
                   jax.ShapeDtypeStruct((n_blocks, 8, W), jnp.float32)),
        grid_spec=pltpu.PrefetchScalarGridSpec(
            num_scalar_prefetch=0,
            grid=(n_blocks,),
            in_specs=[
                pl.BlockSpec((tile_rows, W), lambda i: (i, 0)),
                pl.BlockSpec((tile_rows, W), lambda i: (i, 0)),
            ],
            out_specs=[
                pl.BlockSpec((1, 8, W), lambda i: (i, 0, 0)),
                pl.BlockSpec((1, 8, W), lambda i: (i, 0, 0)),
            ],
        ),
        compiler_params=pltpu.CompilerParams(
            dimension_semantics=("parallel",),   # no carried state -> megacore-safe
            vmem_limit_bytes=vmem_limit,
        ),
        cost_estimate=cost,
    )(x2, y2)

    # Tiny finalize (n_blocks * 8 * W f32 values) in plain JAX.
    return jnp.sum(num_parts) / jnp.sum(den_parts)


def _reference(x_mag, y_mag):
    xs = jnp.sqrt(x_mag)
    ys = jnp.sqrt(y_mag)
    return jnp.sum(jnp.abs(ys - xs)) / jnp.sum(jnp.abs(ys))


if __name__ == "__main__":
    k1, k2, k3, k4, k5, k6 = jax.random.split(jax.random.PRNGKey(0), 6)

    # Case 1: (2, 16, 128) — lane-aligned slab, single block, no masking.
    x1 = jax.random.uniform(k1, (2, 16, 128), dtype=jnp.float32, minval=0.0, maxval=4.0)
    y1 = jax.random.uniform(k2, (2, 16, 128), dtype=jnp.float32, minval=0.0, maxval=4.0)
    loss1 = jax.jit(spectral_convergence_loss)(x1, y1)
    jax.block_until_ready(loss1)
    assert jnp.allclose(loss1, _reference(x1, y1), rtol=1e-5, atol=1e-6), loss1

    # Case 2: ragged rows across multiple blocks (34 rows, 16-row tiles) —
    # exercises the unmasked fast path, the masked last tile, and the
    # "parallel" grid with per-block partial outputs.
    x2 = jax.random.uniform(k3, (2, 17, 128), dtype=jnp.float32, minval=0.0, maxval=4.0)
    y2 = jax.random.uniform(k4, (2, 17, 128), dtype=jnp.float32, minval=0.0, maxval=4.0)
    loss2 = jax.jit(functools.partial(spectral_convergence_loss, block_rows=16))(x2, y2)
    jax.block_until_ready(loss2)
    assert jnp.allclose(loss2, _reference(x2, y2), rtol=1e-5, atol=1e-6), loss2

    # Case 3: freq_bins = 257 (odd, as in a 512-pt STFT) — lane-padded
    # fallback slab + ragged single-tile mask.
    x3 = jax.random.uniform(k5, (2, 9, 257), dtype=jnp.float32, minval=0.0, maxval=4.0)
    y3 = jax.random.uniform(k6, (2, 9, 257), dtype=jnp.float32, minval=0.0, maxval=4.0)
    loss3 = jax.jit(spectral_convergence_loss)(x3, y3)
    jax.block_until_ready(loss3)
    assert jnp.allclose(loss3, _reference(x3, y3), rtol=1e-5, atol=1e-6), loss3

    print("KERNEL_OK")
</pallas_src>

<mosaic_0001>
module attributes {stable_mosaic.version = 11 : i64} {
  func.func @_sc_partials_kernel(%arg0: i32, %arg1: memref<32x128xf32, #tpu.memory_space<vmem>>, %arg2: memref<32x128xf32, #tpu.memory_space<vmem>>, %arg3: memref<1x8x128xf32, #tpu.memory_space<vmem>>, %arg4: memref<1x8x128xf32, #tpu.memory_space<vmem>>) attributes {dimension_semantics = [#tpu.dimension_semantics<parallel>], iteration_bounds = array<i64: 1>, scalar_prefetch = 0 : i64, scratch_operands = 0 : i64, tpu.core_type = #tpu.core_type<tc>, window_params = [{transform_indices = @transform_0, window_bounds = array<i64: 32, 128>}, {transform_indices = @transform_1, window_bounds = array<i64: 32, 128>}, {transform_indices = @transform_2, window_bounds = array<i64: 1, 8, 128>}, {transform_indices = @transform_3, window_bounds = array<i64: 1, 8, 128>}]} {
    %c0 = arith.constant 0 : index
    %c0_0 = arith.constant 0 : index
    %0 = vector.load %arg1[%c0, %c0_0] : memref<32x128xf32, #tpu.memory_space<vmem>>, vector<32x128xf32>
    %c0_1 = arith.constant 0 : index
    %c0_2 = arith.constant 0 : index
    %1 = vector.load %arg2[%c0_1, %c0_2] : memref<32x128xf32, #tpu.memory_space<vmem>>, vector<32x128xf32>
    %2 = math.sqrt %0 : vector<32x128xf32>
    %3 = math.sqrt %1 : vector<32x128xf32>
    %4 = arith.subf %3, %2 : vector<32x128xf32>
    %5 = math.absf %4 : vector<32x128xf32>
    %6 = vector.shape_cast %5 : vector<32x128xf32> to vector<4x8x128xf32>
    %cst = arith.constant dense<0.000000e+00> : vector<8x128xf32>
    %7 = vector.multi_reduction <add>, %6, %cst [0] : vector<4x8x128xf32> to vector<8x128xf32>
    %c0_3 = arith.constant 0 : index
    %c0_4 = arith.constant 0 : index
    %c0_5 = arith.constant 0 : index
    %8 = vector.load %arg3[%c0_3, %c0_4, %c0_5] : memref<1x8x128xf32, #tpu.memory_space<vmem>>, vector<1x8x128xf32>
    %9 = vector.shape_cast %8 : vector<1x8x128xf32> to vector<8x128xf32>
    %10 = vector.shape_cast %7 : vector<8x128xf32> to vector<1x8x128xf32>
    tpu.vector_store %arg3[%c0_3, %c0_4, %c0_5], %10 {strides = array<i32>} : memref<1x8x128xf32, #tpu.memory_space<vmem>>, vector<1x8x128xf32>,
    %11 = vector.shape_cast %3 : vector<32x128xf32> to vector<4x8x128xf32>
    %cst_6 = arith.constant dense<0.000000e+00> : vector<8x128xf32>
    %12 = vector.multi_reduction <add>, %11, %cst_6 [0] : vector<4x8x128xf32> to vector<8x128xf32>
    %c0_7 = arith.constant 0 : index
    %c0_8 = arith.constant 0 : index
    %c0_9 = arith.constant 0 : index
    %13 = vector.load %arg4[%c0_7, %c0_8, %c0_9] : memref<1x8x128xf32, #tpu.memory_space<vmem>>, vector<1x8x128xf32>
    %14 = vector.shape_cast %13 : vector<1x8x128xf32> to vector<8x128xf32>
    %15 = vector.shape_cast %12 : vector<8x128xf32> to vector<1x8x128xf32>
    tpu.vector_store %arg4[%c0_7, %c0_8, %c0_9], %15 {strides = array<i32>} : memref<1x8x128xf32, #tpu.memory_space<vmem>>, vector<1x8x128xf32>,
    return
  }
  func.func @transform_0(%arg0: i32) -> (i32, i32) {
    %c0_i32 = arith.constant 0 : i32
    %c0_i32_0 = arith.constant 0 : i32
    return %arg0, %c0_i32 : i32, i32
  }
  func.func @transform_1(%arg0: i32) -> (i32, i32) {
    %c0_i32 = arith.constant 0 : i32
    %c0_i32_0 = arith.constant 0 : i32
    return %arg0, %c0_i32 : i32, i32
  }
  func.func @transform_2(%arg0: i32) -> (i32, i32, i32) {
    %c0_i32 = arith.constant 0 : i32
    %c0_i32_0 = arith.constant 0 : i32
    %c0_i32_1 = arith.constant 0 : i32
    return %arg0, %c0_i32, %c0_i32_0 : i32, i32, i32
  }
  func.func @transform_3(%arg0: i32) -> (i32, i32, i32) {
    %c0_i32 = arith.constant 0 : i32
    %c0_i32_0 = arith.constant 0 : i32
    %c0_i32_1 = arith.constant 0 : i32
    return %arg0, %c0_i32, %c0_i32_0 : i32, i32, i32
  }
}

</mosaic_0001>

<bundles_post_ra>
// kernel: spectral_convergence_loss.1
= control target key start
LH: loop header
LB: loop body
LE: loop exit
PB: predicated region body
PF: predicated region fallthrough
CT: control target
= control target key end

     0   :  { %9 = vsyncpa [#allocation3], 0  ;;  %s397_s0 = inlined_call_operand.hbm [shape: f32[32,128], index: 0, kind: input, shape index: {}]   ;;  %s398_s1 = inlined_call_operand.hbm [shape: f32[32,128], index: 1, kind: input, shape index: {}]   ;;  %s399_s2 = inlined_call_operand.vmem [shape: f32[1,8,128], index: 2, kind: output, shape index: {0}]   ;;  %s400_s3 = inlined_call_operand.vmem [shape: f32[1,8,128], index: 3, kind: output, shape index: {1}]  }
   0x1   :  { %s15_s14 = sshll.u32 %s397_s0, 4  ;;  %s16_s14 = int_to_ptr.hbm [resolvable:$true] %s15_s14 }
   0x2   :  { %10 = vsyncpa [#allocation5], 0  ;;  %s247_s15 = smov [#allocation2]   ;;  %s28_s19 = sshll.u32 %s398_s1, 4  ;;  %s29_s19 = int_to_ptr.hbm [resolvable:$true] %s28_s19 }
   0x3   :  { %s17_s16 = sshll.u32 %s247_s15, 4  ;;  %s248_s20 = smov 128   ;;  %s18_s16 = int_to_ptr.vmem [resolvable:$true] %s17_s16 }
   0x4   :  { %s249_s21 = smov 8   ;;  %s250_s22 = smov [#allocation4]  }
   0x5   :  { %23 = dma.hbm_to_vmem [thread:$0]  %s16_s14, 512, %s18_s16, [#allocation3], %s248_s20, %s248_s20, %s249_s21  }
   0x6   :  { %s30_s23 = sshll.u32 %s250_s22, 4  ;;  %s31_s23 = int_to_ptr.vmem [resolvable:$true] %s30_s23 }
   0x7   :  { %36 = dma.hbm_to_vmem [thread:$0]  %s29_s19, 512, %s31_s23, [#allocation5], %s248_s20, %s248_s20, %s249_s21  }
   0x8   :  { %243 = dma.done.wait [#allocation3], 512  }
   0x9   :  { %244 = vsyncadd [#allocation3], 4294966784 }
   0xa   :  { %245 = dma.done.wait [#allocation5], 512  }
   0xb   :  { %246 = vsyncadd [#allocation5], 4294966784  ;;  %v277_v0 = vld [vmem:[#allocation2] sm:$0xff]  ;;  %v279_v1 = vld [vmem:[#allocation2 + $0x8] sm:$0xff] }
   0xc   :  { %v281_v2 = vld [vmem:[#allocation2 + $0x10] sm:$0xff]  ;;  %v283_v3 = vld [vmem:[#allocation2 + $0x18] sm:$0xff]  ;;  %179 = vrsqrt.f32 %v277_v0  ;;  %v286_v4 = vld [vmem:[#allocation4] sm:$0xff]  ;;  %vm60_vm0 = vcmp.eq.f32.partialorder %v277_v0, inf  ;;  %v63_v12 = vand.u32 2147483648, %v277_v0  ;;  %vm72_vm1 = vcmp.eq.f32.partialorder %v279_v1, inf }
   0xd   :  { %181 = vrsqrt.f32 %v279_v1  ;;  %v289_v5 = vld [vmem:[#allocation4 + $0x8] sm:$0xff]  ;;  %v292_v6 = vld [vmem:[#allocation4 + $0x10] sm:$0xff]  ;;  %v295_v7 = vld [vmem:[#allocation4 + $0x18] sm:$0xff]  ;;  %v75_v16 = vand.u32 2147483648, %v279_v1  ;;  %vm84_vm2 = vcmp.eq.f32.partialorder %v281_v2, inf  ;;  %v87_v20 = vand.u32 2147483648, %v281_v2 }
   0xe   :  { %183 = vrsqrt.f32 %v281_v2  ;;  %v99_v22 = vand.u32 2147483648, %v283_v3  ;;  %vm62_vm3 = vcmp.eq.f32.partialorder %v277_v0, 0.0  ;;  %v111_v27 = vand.u32 2147483648, %v286_v4 }
   0xf   :  { %185 = vrsqrt.f32 %v283_v3  ;;  %vm74_vm4 = vcmp.eq.f32.partialorder %v279_v1, 0.0  ;;  %vm86_vm5 = vcmp.eq.f32.partialorder %v281_v2, 0.0  ;;  %vm108_vm6 = vcmp.eq.f32.partialorder %v286_v4, inf }
  0x10   :  { %187 = vrsqrt.f32 %v286_v4  ;;  %v123_v32 = vand.u32 2147483648, %v289_v5  ;;  %vm96_vm7 = vcmp.eq.f32.partialorder %v283_v3, inf  ;;  %vm110_vm8 = vcmp.eq.f32.partialorder %v286_v4, 0.0 }
  0x11   :  { %189 = vrsqrt.f32 %v289_v5  ;;  %vm120_vm9 = vcmp.eq.f32.partialorder %v289_v5, inf  ;;  %vm122_vm10 = vcmp.eq.f32.partialorder %v289_v5, 0.0  ;;  %vm132_vm11 = vcmp.eq.f32.partialorder %v292_v6, inf }
  0x12   :  { %v180_v8 = vpop.eup %179  ;;  %191 = vrsqrt.f32 %v292_v6  ;;  %vm134_vm12 = vcmp.eq.f32.partialorder %v292_v6, 0.0  ;;  %vm98_vm13 = vcmp.eq.f32.partialorder %v283_v3, 0.0  ;;  %vm144_vm14 = vcmp.eq.f32.partialorder %v295_v7, inf }
  0x13   :  { %v182_v9 = vpop.eup %181  ;;  %v54_v10 = vmul.f32 %v180_v8, %v277_v0  ;;  %193 = vrsqrt.f32 %v295_v7  ;;  %vm146_vm15 = vcmp.eq.f32.partialorder %v295_v7, 0.0 }
  0x14   :  { %v184_v11 = vpop.eup %183  ;;  %v66_v13 = vmul.f32 %v182_v9, %v279_v1 }
  0x15   :  { %v186_v14 = vpop.eup %185  ;;  %v55_v15 = vmul.f32 %v180_v8, %v54_v10  ;;  %v78_v17 = vmul.f32 %v184_v11, %v281_v2 }
  0x16   :  { %v188_v18 = vpop.eup %187  ;;  %v67_v19 = vmul.f32 %v182_v9, %v66_v13  ;;  %v90_v21 = vmul.f32 %v186_v14, %v283_v3 }
  0x17   :  { %v190_v23 = vpop.eup %189  ;;  %v56_v24 = vmul.f32 0.5, %v55_v15  ;;  %v79_v25 = vmul.f32 %v184_v11, %v78_v17  ;;  %v102_v26 = vmul.f32 %v188_v18, %v286_v4 }
  0x18   :  { %v192_v28 = vpop.eup %191  ;;  %v68_v29 = vmul.f32 0.5, %v67_v19  ;;  %v91_v30 = vmul.f32 %v186_v14, %v90_v21  ;;  %v114_v31 = vmul.f32 %v190_v23, %v289_v5 }
  0x19   :  { %v194_v33 = vpop.eup %193  ;;  %v57_v34 = vsub.f32 1.5, %v56_v24  ;;  %v80_v35 = vmul.f32 0.5, %v79_v25  ;;  %v103_v36 = vmul.f32 %v188_v18, %v102_v26  ;;  %v126_v37 = vmul.f32 %v192_v28, %v292_v6 }
  0x1a   :  { %v69_v38 = vsub.f32 1.5, %v68_v29  ;;  %v92_v39 = vmul.f32 0.5, %v91_v30  ;;  %v115_v40 = vmul.f32 %v190_v23, %v114_v31  ;;  %v138_v41 = vmul.f32 %v194_v33, %v295_v7 }
  0x1b   :  { %v58_v42 = vmul.f32 %v180_v8, %v57_v34  ;;  %v81_v43 = vsub.f32 1.5, %v80_v35  ;;  %v104_v44 = vmul.f32 0.5, %v103_v36  ;;  %v127_v45 = vmul.f32 %v192_v28, %v126_v37 }
  0x1c   :  { %v70_v46 = vmul.f32 %v182_v9, %v69_v38  ;;  %v93_v47 = vsub.f32 1.5, %v92_v39  ;;  %v116_v48 = vmul.f32 0.5, %v115_v40  ;;  %v139_v49 = vmul.f32 %v194_v33, %v138_v41 }
  0x1d   :  { %v59_v50 = vmul.f32 %v58_v42, %v277_v0  ;;  %v82_v51 = vmul.f32 %v184_v11, %v81_v43  ;;  %v105_v52 = vsub.f32 1.5, %v104_v44  ;;  %v128_v53 = vmul.f32 0.5, %v127_v45 }
  0x1e   :  { %v71_v54 = vmul.f32 %v70_v46, %v279_v1  ;;  %v94_v55 = vmul.f32 %v186_v14, %v93_v47  ;;  %v117_v56 = vsub.f32 1.5, %v116_v48  ;;  %v140_v57 = vmul.f32 0.5, %v139_v49 }
  0x1f   :  { %v61_v58 = vsel %vm60_vm0, %v277_v0, %v59_v50  ;;  %v83_v59 = vmul.f32 %v82_v51, %v281_v2  ;;  %v106_v60 = vmul.f32 %v188_v18, %v105_v52  ;;  %v129_v61 = vsub.f32 1.5, %v128_v53 }
  0x20   :  { %v73_v62 = vsel %vm72_vm1, %v279_v1, %v71_v54  ;;  %v95_v63 = vmul.f32 %v94_v55, %v283_v3  ;;  %v118_v8 = vmul.f32 %v190_v23, %v117_v56  ;;  %v135_v9 = vand.u32 2147483648, %v292_v6 }
  0x21   :  { %v85_v10 = vsel %vm84_vm2, %v281_v2, %v83_v59  ;;  %v107_v11 = vmul.f32 %v106_v60, %v286_v4  ;;  %v130_v13 = vmul.f32 %v192_v28, %v129_v61  ;;  %v64_v14 = vsel %vm62_vm3, %v63_v12, %v61_v58 }
  0x22   :  { %v119_v15 = vmul.f32 %v118_v8, %v289_v5  ;;  %v141_v17 = vsub.f32 1.5, %v140_v57  ;;  %v76_v18 = vsel %vm74_vm4, %v75_v16, %v73_v62  ;;  %v88_v19 = vsel %vm86_vm5, %v87_v20, %v85_v10 }
  0x23   :  { %v109_v0 = vsel %vm108_vm6, %v286_v4, %v107_v11  ;;  %v131_v12 = vmul.f32 %v130_v13, %v292_v6  ;;  %v97_v21 = vsel %vm96_vm7, %v283_v3, %v95_v63  ;;  %v147_v24 = vand.u32 2147483648, %v295_v7 }
  0x24   :  { %v112_v1 = vsel %vm110_vm8, %v111_v27, %v109_v0  ;;  %v121_v2 = vsel %vm120_vm9, %v289_v5, %v119_v15  ;;  %v142_v16 = vmul.f32 %v194_v33, %v141_v17  ;;  %v100_v5 = vsel %vm98_vm13, %v99_v22, %v97_v21 }
  0x25   :  { %v124_v20 = vsel %vm122_vm10, %v123_v32, %v121_v2  ;;  %v133_v23 = vsel %vm132_vm11, %v292_v6, %v131_v12  ;;  %v149_v25 = vsub.f32 %v112_v1, %v64_v14 }
  0x26   :  { %v136_v26 = vsel %vm134_vm12, %v135_v9, %v133_v23  ;;  %v143_v4 = vmul.f32 %v142_v16, %v295_v7  ;;  %v150_v27 = vsub.f32 %v124_v20, %v76_v18  ;;  %v161_v28 = vadd.f32 %v124_v20, %v112_v1 }
  0x27   :  { %v151_v29 = vsub.f32 %v136_v26, %v88_v19  ;;  %v153_v30 = vand.u32 2147483647, %v149_v25 }
  0x28   :  { %v145_v31 = vsel %vm144_vm14, %v295_v7, %v143_v4  ;;  %v154_v32 = vand.u32 2147483647, %v150_v27  ;;  %v162_v33 = vadd.f32 %v161_v28, %v136_v26 }
  0x29   :  { %v148_v6 = vsel %vm146_vm15, %v147_v24, %v145_v31  ;;  %v155_v34 = vand.u32 2147483647, %v151_v29 }
  0x2a   :  { %v152_v35 = vsub.f32 %v148_v6, %v100_v5  ;;  %v157_v36 = vadd.f32 %v154_v32, %v153_v30  ;;  %v163_v37 = vadd.f32 %v162_v33, %v148_v6 }
  0x2c   :  { %v156_v38 = vand.u32 2147483647, %v152_v35  ;;  %v158_v39 = vadd.f32 %v157_v36, %v155_v34  ;;  %164 = vst [vmem:[%s400_s3] sm:$0xff] %v163_v37 }
  0x2e   :  { %v159_v3 = vadd.f32 %v158_v39, %v156_v38 }
  0x30   :  { %160 = vst [vmem:[%s399_s2] sm:$0xff] %v159_v3 }
  0x31   :  { %173 = vsyncpa [#allocation3], 1 }
  0x32   :  { %174 = vsyncpa [#allocation5], 1 }

</bundles_post_ra>
